<compile_context>
chip_gen: v7x
topology: tpu7x:2x2x1
jax: 0.10.0
libtpu: 0.0.40
codegen_flags: <defaults>
</compile_context>

<pallas_src>
import math

import jax
import jax.numpy as jnp
from jax import lax
from jax.experimental import pallas as pl
from jax.experimental.pallas import tpu as pltpu

IN_FEATURES = 3 * 64 * 64   # 12288 (K)
OUT_FEATURES = 6            # (N)
TILE_M = 256                # batch tile used when B > TILE_M
_SPLIT_MIN_B = 16           # min batch to split into 2 parallel grid steps
_VMEM_LIMIT_BYTES = 40 << 20


def _linear_kernel(x_ref, w_ref, b_ref, o_ref):
    """out = x @ w.T + b for one batch tile.

    x_ref: (tile_m, K), w_ref: (N, K) lane-dense, b_ref: (1, N).
    Contract K (dim 1 of x) against K (dim 1 of w); f32 MXU accumulation.
    """
    o_ref[...] = (
        lax.dot_general(
            x_ref[...],
            w_ref[...],
            dimension_numbers=(((1,), (1,)), ((), ())),
            preferred_element_type=jnp.float32,
        )
        + b_ref[...]
    ).astype(o_ref.dtype)


def prepare_params(weight, bias):
    """One-time conversion from PyTorch nn.Linear layout to kernel layout.

    weight: (OUT_FEATURES, IN_FEATURES) -- kept lane-dense, NOT transposed.
    bias:   (OUT_FEATURES,)             -> (1, OUT_FEATURES)
    """
    w = jnp.asarray(weight, jnp.float32)                         # (6, 12288)
    b2d = jnp.asarray(bias, jnp.float32).reshape(1, OUT_FEATURES)
    return w, b2d


def _round_up(x, m):
    return (x + m - 1) // m * m


def _tiling(batch):
    """Pick (tile_m, grid_m) for the batch axis."""
    if batch > TILE_M:
        return TILE_M, pl.cdiv(batch, TILE_M)
    if batch >= _SPLIT_MIN_B:
        # Two parallel grid steps so both v7x TensorCores pull x concurrently.
        return _round_up(pl.cdiv(batch, 2), 8), 2
    return batch, 1


@jax.jit
def linear_classifier_forward(x, w, b2d):
    """Pallas forward pass.

    x:   (B, 3, 64, 64) float32
    w:   (OUT_FEATURES, IN_FEATURES) float32  (PyTorch layout, lane-dense)
    b2d: (1, OUT_FEATURES) float32
    returns (B, OUT_FEATURES) float32
    """
    B = x.shape[0]
    x2d = x.reshape(B, -1)                     # (B, K) -- same as torch .view
    tile_m, grid_m = _tiling(B)

    cost = pl.CostEstimate(
        flops=2 * B * IN_FEATURES * OUT_FEATURES,
        transcendentals=0,
        bytes_accessed=4 * (B * IN_FEATURES
                            + IN_FEATURES * OUT_FEATURES
                            + B * OUT_FEATURES
                            + OUT_FEATURES),
    )

    return pl.pallas_call(
        _linear_kernel,
        out_shape=jax.ShapeDtypeStruct((B, OUT_FEATURES), jnp.float32),
        grid=(grid_m,),
        in_specs=[
            pl.BlockSpec((tile_m, IN_FEATURES), lambda i: (i, 0)),        # x tile
            pl.BlockSpec((OUT_FEATURES, IN_FEATURES), lambda i: (0, 0)),  # full weight (lane-dense)
            pl.BlockSpec((1, OUT_FEATURES), lambda i: (0, 0)),            # bias
        ],
        out_specs=pl.BlockSpec((tile_m, OUT_FEATURES), lambda i: (i, 0)),
        compiler_params=pltpu.CompilerParams(
            dimension_semantics=("parallel",),     # batch axis is independent
            vmem_limit_bytes=_VMEM_LIMIT_BYTES,
        ),
        cost_estimate=cost,
    )(x2d, w, b2d)


def init_params(key):
    """Deterministic init matching torch.nn.Linear defaults:
    U(-1/sqrt(in_features), 1/sqrt(in_features)) for both weight and bias."""
    k_w, k_b = jax.random.split(key)
    bound = 1.0 / math.sqrt(IN_FEATURES)
    weight = jax.random.uniform(
        k_w, (OUT_FEATURES, IN_FEATURES), jnp.float32, -bound, bound
    )
    bias = jax.random.uniform(k_b, (OUT_FEATURES,), jnp.float32, -bound, bound)
    return weight, bias


def _check(batch, k_x, weight, bias, w, b2d):
    x = jax.random.normal(k_x, (batch, 3, 64, 64), jnp.float32)
    out = jax.block_until_ready(linear_classifier_forward(x, w, b2d))
    ref = x.reshape(batch, -1) @ weight.T + bias
    assert out.shape == (batch, OUT_FEATURES)
    err = float(jnp.max(jnp.abs(out - ref)))
    assert jnp.allclose(out, ref, atol=1e-4, rtol=1e-3), err


if __name__ == "__main__":
    key = jax.random.PRNGKey(0)
    k_p, k1, k2, k3 = jax.random.split(key, 4)

    weight, bias = init_params(k_p)
    w, b2d = prepare_params(weight, bias)      # one-time layout prep

    _check(2, k1, weight, bias, w, b2d)        # small batch: single grid step
    _check(20, k2, weight, bias, w, b2d)       # 2 parallel steps + partial tile
    _check(300, k3, weight, bias, w, b2d)      # TILE_M path + partial final tile

    print("KERNEL_OK")
</pallas_src>

<mosaic_0001>
module attributes {stable_mosaic.version = 11 : i64} {
  func.func @_linear_kernel(%arg0: i32, %arg1: memref<2x12288xf32, #tpu.memory_space<vmem>>, %arg2: memref<6x12288xf32, #tpu.memory_space<vmem>>, %arg3: memref<1x6xf32, #tpu.memory_space<vmem>>, %arg4: memref<2x6xf32, #tpu.memory_space<vmem>>) attributes {dimension_semantics = [#tpu.dimension_semantics<parallel>], iteration_bounds = array<i64: 1>, scalar_prefetch = 0 : i64, scratch_operands = 0 : i64, tpu.core_type = #tpu.core_type<tc>, window_params = [{transform_indices = @transform_0, window_bounds = array<i64: 2, 12288>}, {pipeline_mode = #tpu.pipeline_mode<synchronous>, transform_indices = @transform_1, window_bounds = array<i64: 6, 12288>}, {pipeline_mode = #tpu.pipeline_mode<synchronous>, transform_indices = @transform_2, window_bounds = array<i64: 1, 6>}, {transform_indices = @transform_3, window_bounds = array<i64: 2, 6>}]} {
    %c0 = arith.constant 0 : index
    %c0_0 = arith.constant 0 : index
    %0 = vector.load %arg1[%c0, %c0_0] : memref<2x12288xf32, #tpu.memory_space<vmem>>, vector<2x12288xf32>
    %c0_1 = arith.constant 0 : index
    %c0_2 = arith.constant 0 : index
    %1 = vector.load %arg2[%c0_1, %c0_2] : memref<6x12288xf32, #tpu.memory_space<vmem>>, vector<6x12288xf32>
    %cst = arith.constant dense<0.000000e+00> : vector<2x6xf32>
    %2 = tpu.matmul %0, %1, %cst {dimension_numbers = #tpu.dot_dimension_numbers<[1], [1], [0], [0], [0, 0, 1, 0], [], []>} : vector<2x12288xf32>, vector<6x12288xf32>, vector<2x6xf32> -> vector<2x6xf32>
    %c0_3 = arith.constant 0 : index
    %c0_4 = arith.constant 0 : index
    %3 = vector.load %arg3[%c0_3, %c0_4] : memref<1x6xf32, #tpu.memory_space<vmem>>, vector<1x6xf32>
    %4 = vector.broadcast %3 : vector<1x6xf32> to vector<2x6xf32>
    %5 = arith.addf %2, %4 : vector<2x6xf32>
    %c0_5 = arith.constant 0 : index
    %c0_6 = arith.constant 0 : index
    %6 = vector.load %arg4[%c0_5, %c0_6] : memref<2x6xf32, #tpu.memory_space<vmem>>, vector<2x6xf32>
    tpu.vector_store %arg4[%c0_5, %c0_6], %5 {strides = array<i32>} : memref<2x6xf32, #tpu.memory_space<vmem>>, vector<2x6xf32>,
    return
  }
  func.func @transform_0(%arg0: i32) -> (i32, i32) {
    %c0_i32 = arith.constant 0 : i32
    %c0_i32_0 = arith.constant 0 : i32
    return %arg0, %c0_i32 : i32, i32
  }
  func.func @transform_1(%arg0: i32) -> (i32, i32) {
    %c0_i32 = arith.constant 0 : i32
    %c0_i32_0 = arith.constant 0 : i32
    %c0_i32_1 = arith.constant 0 : i32
    return %c0_i32, %c0_i32_0 : i32, i32
  }
  func.func @transform_2(%arg0: i32) -> (i32, i32) {
    %c0_i32 = arith.constant 0 : i32
    %c0_i32_0 = arith.constant 0 : i32
    %c0_i32_1 = arith.constant 0 : i32
    return %c0_i32, %c0_i32_0 : i32, i32
  }
  func.func @transform_3(%arg0: i32) -> (i32, i32) {
    %c0_i32 = arith.constant 0 : i32
    %c0_i32_0 = arith.constant 0 : i32
    return %arg0, %c0_i32 : i32, i32
  }
}

</mosaic_0001>

<bundles_post_ra>
// kernel: linear_classifier_forward.1
= control target key start
LH: loop header
LB: loop body
LE: loop exit
PB: predicated region body
PF: predicated region fallthrough
CT: control target
= control target key end

     0   :  { %8 = vsyncpa [#allocation3], 0  ;;  %s4401_s0 = inlined_call_operand.vmem [shape: f32[2,12288], index: 0, kind: input, shape index: {}]   ;;  %s4402_s1 = inlined_call_operand.hbm [shape: f32[6,12288], index: 1, kind: input, shape index: {}]   ;;  %s4403_s2 = inlined_call_operand.vmem [shape: f32[1,6], index: 2, kind: input, shape index: {}]   ;;  %s4404_s3 = inlined_call_operand.hbm [shape: f32[2,6], index: 3, kind: output, shape index: {}]  }
   0x1   :  { %9 = vsyncpa [#allocation4], 0  ;;  %s4229_s12 = smov [#allocation2]   ;;  %s4181_s16 = scalar_lea.hbm %s4402_s1, 12288 }
   0x2   :  { %s18_s13 = sshll.u32 %s4229_s12, 4  ;;  %p4182_p0 = scmp.ne.s32.totalorder %s4402_s1, %s4181_s16  ;;  %s19_s13 = int_to_ptr.vmem [resolvable:$true] %s18_s13 }
   0x3   :  { %p4185_p1 = scmp.lt.u32.totalorder %s4181_s16, %s4402_s1 }
   0x5   :  { %p4187_p2 = pnand %p4185_p1, %p4182_p0 }
   0x7   :  { %4190 = shalt.err (!%p4187_p2)
}
   0x8   :  { %s4191_s21 = scalar_lea.vmem %s19_s13, 12288  ;;  %p4196_p4 = scmp.lt.s32.totalorder %s19_s13, %s19_s13 }
   0x9   :  { %p4192_p3 = scmp.ne.s32.totalorder %s19_s13, %s4191_s21  ;;  %p4197_p5 = scmp.lt.s32.totalorder %s4191_s21, %s4191_s21 }
   0xb   :  { %p4198_p6 = por %p4197_p5, %p4196_p4 }
   0xd   :  { %p4199_p7 = pnand %p4198_p6, %p4192_p3 }
   0xf   :  { %4202 = shalt.err (!%p4199_p7)
}
  0x10   :  { %21 = dma.hbm_to_vmem [thread:$0]  %s4402_s1, 12288, %s19_s13, [#allocation3]  }
  0x11   :  { %4225 = dma.done.wait [#allocation3], 12288  }
  0x12   :  { %4226 = vsyncadd [#allocation3], 4294955008  ;;  %v182_v0 = vlaneseq  ;;  %v4230_v1 = vmov 1983009808   ;;  %v52_v6 = vld [vmem:[#allocation2 + $0x8] sm:$0x3f] }
  0x13   :  { %v180_v2 = vunpack.c.l.s4 %v4230_v1  ;;  %v51_v7 = vld [vmem:[#allocation2] sm:$0x3f]  ;;  %v100_v8 = vld [vmem:[#allocation2 + $0x188] sm:$0x3f]  ;;  %682 = vmatprep.subr.mxu1 %v52_v6  ;;  %v54_v11 = vld [vmem:[#allocation2 + $0x18] sm:$0x3f] }
  0x14   :  { %v183_v3 = vshrl.u32 %v182_v0, 7  ;;  %2362 = vmatprep.subr.mxu0 %v100_v8  ;;  %v99_v9 = vld [vmem:[#allocation2 + $0x180] sm:$0x3f]  ;;  %683 = vmatpush1.xpose.msra.mxu1 %v51_v7  ;;  %v102_v15 = vld [vmem:[#allocation2 + $0x198] sm:$0x3f]  ;;  %v28_v25 = vld [vmem:[%s4401_s0 + $0x8] sm:$0xff] }
  0x15   :  { %v181_v4 = vunpack.c.0.s8 %v180_v2  ;;  %v27_v10 = vld [vmem:[%s4401_s0] sm:$0xff]  ;;  %2363 = vmatpush1.xpose.msra.mxu0 %v99_v9  ;;  %752 = vmatprep.subr.mxu1 %v54_v11  ;;  %v53_v21 = vld [vmem:[#allocation2 + $0x10] sm:$0x3f]  ;;  %v56_v26 = vld [vmem:[#allocation2 + $0x28] sm:$0x3f]  ;;  %v195_v34 = vcombine.high %v28_v25, %v28_v25  ;;  %s4231_s17 = smov [#allocation5]  }
  0x16   :  { %v178_v12 = vcombine.high %v27_v10, %v27_v10  ;;  %v39_v14 = vld [vmem:[%s4401_s0 + $0x60] sm:$0xff]  ;;  %2432 = vmatprep.subr.mxu0 %v102_v15  ;;  %v101_v23 = vld [vmem:[#allocation2 + $0x190] sm:$0x3f]  ;;  %v40_v28 = vld [vmem:[%s4401_s0 + $0x68] sm:$0xff]  ;;  %s4050_s18 = sshll.u32 %s4231_s17, 4  ;;  %vm4042_vm0 = vcmask 41984   ;;  %s4051_s18 = int_to_ptr.vmem [resolvable:$true] %s4050_s18 }
  0x17   :  { %v4264_v5 = vsub.s32 %v181_v4, %v183_v3  ;;  %v382_v16 = vcombine.high %v39_v14, %v39_v14  ;;  %v104_v29 = vld [vmem:[#allocation2 + $0x1a8] sm:$0x3f]  ;;  %v55_v32 = vld [vmem:[#allocation2 + $0x20] sm:$0x3f]  ;;  %v399_v37 = vcombine.high %v40_v28, %v40_v28  ;;  %v58_v38 = vld [vmem:[#allocation2 + $0x38] sm:$0x3f]  ;;  %p4208_p9 = scmp.lt.s32.totalorder %s4051_s18, %s4051_s18 }
  0x18   :  { %v103_v35 = vld [vmem:[#allocation2 + $0x1a0] sm:$0x3f]  ;;  %v106_v39 = vld [vmem:[#allocation2 + $0x1b8] sm:$0x3f]  ;;  %v57_v42 = vld [vmem:[#allocation2 + $0x30] sm:$0x3f] }
  0x19   :  { %v185_v13 = vrot.slane %v27_v10, %v4264_v5  ;;  %v389_v17 = vrot.slane %v39_v14, %v4264_v5  ;;  %v192_v19 = vrot.slane %v178_v12, %v4264_v5  ;;  %v396_v22 = vrot.slane %v382_v16, %v4264_v5  ;;  %v105_v44 = vld [vmem:[#allocation2 + $0x1b0] sm:$0x3f]  ;;  %v60_v47 = vld [vmem:[#allocation2 + $0x48] sm:$0x3f]  ;;  %v59_v52 = vld [vmem:[#allocation2 + $0x40] sm:$0x3f] }
  0x1a   :  { %v202_v30 = vrot.slane %v28_v25, %v4264_v5  ;;  %v406_v31 = vrot.slane %v40_v28, %v4264_v5  ;;  %v209_v40 = vrot.slane %v195_v34, %v4264_v5  ;;  %v413_v41 = vrot.slane %v399_v37, %v4264_v5  ;;  %v29_v46 = vld [vmem:[%s4401_s0 + $0x10] sm:$0xff]  ;;  %v108_v49 = vld [vmem:[#allocation2 + $0x1c8] sm:$0x3f]  ;;  %v107_v55 = vld [vmem:[#allocation2 + $0x1c0] sm:$0x3f]  ;;  %s4203_s19 = scalar_lea.vmem %s4051_s18, 32 }
  0x1b   :  { %v193_v18 = vcombine.high %v185_v13, %v185_v13  ;;  %v397_v20 = vcombine.high %v389_v17, %v389_v17  ;;  %v194_v24 = vcombine.high %v192_v19, %v192_v19  ;;  %v398_v27 = vcombine.high %v396_v22, %v396_v22  ;;  %v41_v48 = vld [vmem:[%s4401_s0 + $0x70] sm:$0xff]  ;;  %v62_v58 = vld [vmem:[#allocation2 + $0x58] sm:$0x3f]  ;;  %v64_v3 = vld [vmem:[#allocation2 + $0x68] sm:$0x3f]  ;;  %p4204_p8 = scmp.ne.s32.totalorder %s4051_s18, %s4203_s19  ;;  %p4209_p10 = scmp.lt.s32.totalorder %s4203_s19, %s4203_s19 }
  0x1c   :  { %v210_v33 = vcombine.high %v202_v30, %v202_v30  ;;  %v414_v36 = vcombine.high %v406_v31, %v406_v31  ;;  %v211_v43 = vcombine.high %v209_v40, %v209_v40  ;;  %v415_v45 = vcombine.high %v413_v41, %v413_v41  ;;  %v110_v59 = vld [vmem:[#allocation2 + $0x1d8] sm:$0x3f]  ;;  %v61_v62 = vld [vmem:[#allocation2 + $0x50] sm:$0x3f]  ;;  %v112_v6 = vld [vmem:[#allocation2 + $0x1e8] sm:$0x3f] }
  0x1d   :  { %746 = vmatprep.mubr.f32.mxu1 %v193_v18  ;;  %2426 = vmatprep.mubr.f32.mxu0 %v397_v20  ;;  %v219_v50 = vrot.slane %v29_v46, %v4264_v5  ;;  %v423_v51 = vrot.slane %v41_v48, %v4264_v5  ;;  %v212_v54 = vcombine.high %v29_v46, %v29_v46  ;;  %v109_v0 = vld [vmem:[#allocation2 + $0x1d0] sm:$0x3f]  ;;  %v30_v2 = vld [vmem:[%s4401_s0 + $0x18] sm:$0xff]  ;;  %v63_v9 = vld [vmem:[#allocation2 + $0x60] sm:$0x3f]  ;;  %p4210_p11 = por %p4209_p10, %p4208_p9 }
  0x1e   :  { %747 = vmatmul.mubr.f32.vlgmr.msra.gmra.mrb[0].mxu1 %v185_v13  ;;  %2427 = vmatmul.mubr.f32.vlgmr.msra.gmra.mrb[0].mxu0 %v389_v17  ;;  %v416_v57 = vcombine.high %v41_v48, %v41_v48  ;;  %v42_v4 = vld [vmem:[%s4401_s0 + $0x78] sm:$0xff]  ;;  %v236_v7 = vrot.slane %v30_v2, %v4264_v5  ;;  %v229_v11 = vcombine.high %v30_v2, %v30_v2  ;;  %v111_v12 = vld [vmem:[#allocation2 + $0x1e0] sm:$0x3f]  ;;  %v120_v46 = vld [vmem:[#allocation2 + $0x228] sm:$0x3f] }
  0x1f   :  { %753 = vmatpush1.xpose.msra.mxu1 %v53_v21  ;;  %2433 = vmatpush1.xpose.msra.mxu0 %v101_v23  ;;  %v227_v53 = vcombine.high %v219_v50, %v219_v50  ;;  %v431_v56 = vcombine.high %v423_v51, %v423_v51  ;;  %v226_v60 = vrot.slane %v212_v54, %v4264_v5  ;;  %v66_v15 = vld [vmem:[#allocation2 + $0x78] sm:$0x3f]  ;;  %v113_v21 = vld [vmem:[#allocation2 + $0x1f0] sm:$0x3f]  ;;  %v31_v23 = vld [vmem:[%s4401_s0 + $0x20] sm:$0xff]  ;;  %p4211_p12 = pnand %p4210_p11, %p4204_p8 }
  0x20   :  { %816 = vmatprep.mubr.f32.mxu1 %v194_v24  ;;  %822 = vmatprep.subr.mxu1 %v56_v26  ;;  %v430_v61 = vrot.slane %v416_v57, %v4264_v5  ;;  %v440_v8 = vrot.slane %v42_v4, %v4264_v5  ;;  %v244_v10 = vcombine.high %v236_v7, %v236_v7  ;;  %v114_v16 = vld [vmem:[#allocation2 + $0x1f8] sm:$0x3f]  ;;  %v68_v24 = vld [vmem:[#allocation2 + $0x88] sm:$0x3f]  ;;  %v43_v25 = vld [vmem:[%s4401_s0 + $0x80] sm:$0xff] }
  0x21   :  { %2496 = vmatprep.mubr.f32.mxu0 %v398_v27  ;;  %2502 = vmatprep.subr.mxu0 %v104_v29  ;;  %v228_v63 = vcombine.high %v226_v60, %v226_v60  ;;  %v433_v14 = vcombine.high %v42_v4, %v42_v4  ;;  %v243_v17 = vrot.slane %v229_v11, %v4264_v5  ;;  %v116_v26 = vld [vmem:[#allocation2 + $0x208] sm:$0x3f]  ;;  %v67_v29 = vld [vmem:[#allocation2 + $0x80] sm:$0x3f] }
  0x22   :  { %v432_v1 = vcombine.high %v430_v61, %v430_v61  ;;  %v448_v13 = vcombine.high %v440_v8, %v440_v8  ;;  %v253_v27 = vrot.slane %v31_v23, %v4264_v5  ;;  %v457_v28 = vrot.slane %v43_v25, %v4264_v5  ;;  %v124_v2 = vld [vmem:[#allocation2 + $0x248] sm:$0x3f] }
  0x23   :  { %v447_v18 = vrot.slane %v433_v14, %v4264_v5  ;;  %v245_v20 = vcombine.high %v243_v17, %v243_v17  ;;  %v450_v34 = vcombine.high %v43_v25, %v43_v25 }
  0x26   :  { %817 = vmatmul.mubr.f32.vlgmr.msra.gmra.mrb[0].mxu1 %v192_v19  ;;  %2497 = vmatmul.mubr.f32.vlgmr.msra.gmra.mrb[0].mxu0 %v396_v22  ;;  %v65_v19 = vld [vmem:[#allocation2 + $0x70] sm:$0x3f]  ;;  %v449_v22 = vcombine.high %v447_v18, %v447_v18 }
  0x27   :  { %823 = vmatpush1.xpose.msra.mxu1 %v55_v32  ;;  %2503 = vmatpush1.xpose.msra.mxu0 %v103_v35  ;;  %v115_v32 = vld [vmem:[#allocation2 + $0x200] sm:$0x3f]  ;;  %v70_v35 = vld [vmem:[#allocation2 + $0x98] sm:$0x3f] }
  0x28   :  { %886 = vmatprep.mubr.f32.mxu1 %v210_v33  ;;  %892 = vmatprep.subr.mxu1 %v58_v38  ;;  %v465_v33 = vcombine.high %v457_v28, %v457_v28  ;;  %v464_v38 = vrot.slane %v450_v34, %v4264_v5 }
  0x29   :  { %2566 = vmatprep.mubr.f32.mxu0 %v414_v36  ;;  %2572 = vmatprep.subr.mxu0 %v106_v39  ;;  %v118_v36 = vld [vmem:[#allocation2 + $0x218] sm:$0x3f]  ;;  %v69_v39 = vld [vmem:[#allocation2 + $0x90] sm:$0x3f] }
  0x2e   :  { %887 = vmatmul.mubr.f32.vlgmr.msra.gmra.mrb[0].mxu1 %v202_v30  ;;  %2567 = vmatmul.mubr.f32.vlgmr.msra.gmra.mrb[0].mxu0 %v406_v31  ;;  %v261_v30 = vcombine.high %v253_v27, %v253_v27  ;;  %v246_v31 = vcombine.high %v31_v23, %v31_v23  ;;  %v128_v23 = vld [vmem:[#allocation2 + $0x268] sm:$0x3f] }
  0x2f   :  { %893 = vmatpush1.xpose.msra.mxu1 %v57_v42  ;;  %2573 = vmatpush1.xpose.msra.mxu0 %v105_v44  ;;  %v466_v42 = vcombine.high %v464_v38, %v464_v38  ;;  %v72_v44 = vld [vmem:[#allocation2 + $0xa8] sm:$0x3f] }
  0x30   :  { %956 = vmatprep.mubr.f32.mxu1 %v211_v43  ;;  %962 = vmatprep.subr.mxu1 %v60_v47  ;;  %v260_v37 = vrot.slane %v246_v31, %v4264_v5  ;;  %v32_v43 = vld [vmem:[%s4401_s0 + $0x28] sm:$0xff] }
  0x31   :  { %2636 = vmatprep.mubr.f32.mxu0 %v415_v45  ;;  %2642 = vmatprep.subr.mxu0 %v108_v49  ;;  %v44_v45 = vld [vmem:[%s4401_s0 + $0x88] sm:$0xff]  ;;  %v270_v47 = vrot.slane %v32_v43, %v4264_v5  ;;  %v71_v49 = vld [vmem:[#allocation2 + $0xa0] sm:$0x3f] }
  0x32   :  { %v474_v48 = vrot.slane %v44_v45, %v4264_v5  ;;  %v467_v54 = vcombine.high %v44_v45, %v44_v45 }
  0x36   :  { %957 = vmatmul.mubr.f32.vlgmr.msra.gmra.mrb[0].mxu1 %v209_v40  ;;  %2637 = vmatmul.mubr.f32.vlgmr.msra.gmra.mrb[0].mxu0 %v413_v41  ;;  %v262_v40 = vcombine.high %v260_v37, %v260_v37  ;;  %v117_v41 = vld [vmem:[#allocation2 + $0x210] sm:$0x3f] }
  0x37   :  { %963 = vmatpush1.xpose.msra.mxu1 %v59_v52  ;;  %2643 = vmatpush1.xpose.msra.mxu0 %v107_v55  ;;  %v119_v52 = vld [vmem:[#allocation2 + $0x220] sm:$0x3f]  ;;  %v74_v55 = vld [vmem:[#allocation2 + $0xb8] sm:$0x3f] }
  0x38   :  { %1026 = vmatprep.mubr.f32.mxu1 %v227_v53  ;;  %1032 = vmatprep.subr.mxu1 %v62_v58  ;;  %v482_v53 = vcombine.high %v474_v48, %v474_v48  ;;  %v481_v58 = vrot.slane %v467_v54, %v4264_v5 }
  0x39   :  { %2706 = vmatprep.mubr.f32.mxu0 %v431_v56  ;;  %2712 = vmatprep.subr.mxu0 %v110_v59  ;;  %v122_v56 = vld [vmem:[#allocation2 + $0x238] sm:$0x3f]  ;;  %v73_v59 = vld [vmem:[#allocation2 + $0xb0] sm:$0x3f] }
  0x3e   :  { %1027 = vmatmul.mubr.f32.vlgmr.msra.gmra.mrb[0].mxu1 %v219_v50  ;;  %2707 = vmatmul.mubr.f32.vlgmr.msra.gmra.mrb[0].mxu0 %v423_v51  ;;  %v278_v50 = vcombine.high %v270_v47, %v270_v47  ;;  %v263_v51 = vcombine.high %v32_v43, %v32_v43  ;;  %v132_v43 = vld [vmem:[#allocation2 + $0x288] sm:$0x3f] }
  0x3f   :  { %1033 = vmatpush1.xpose.msra.mxu1 %v61_v62  ;;  %2713 = vmatpush1.xpose.msra.mxu0 %v109_v0  ;;  %v483_v62 = vcombine.high %v481_v58, %v481_v58  ;;  %v76_v0 = vld [vmem:[#allocation2 + $0xc8] sm:$0x3f] }
  0x40   :  { %1096 = vmatprep.mubr.f32.mxu1 %v228_v63  ;;  %1102 = vmatprep.subr.mxu1 %v64_v3  ;;  %v277_v57 = vrot.slane %v263_v51, %v4264_v5  ;;  %v33_v63 = vld [vmem:[%s4401_s0 + $0x30] sm:$0xff] }
  0x41   :  { %2776 = vmatprep.mubr.f32.mxu0 %v432_v1  ;;  %2782 = vmatprep.subr.mxu0 %v112_v6  ;;  %v45_v1 = vld [vmem:[%s4401_s0 + $0x90] sm:$0xff]  ;;  %v287_v3 = vrot.slane %v33_v63, %v4264_v5  ;;  %v75_v6 = vld [vmem:[#allocation2 + $0xc0] sm:$0x3f] }
  0x42   :  { %v491_v4 = vrot.slane %v45_v1, %v4264_v5  ;;  %v484_v11 = vcombine.high %v45_v1, %v45_v1 }
  0x46   :  { %1097 = vmatmul.mubr.f32.vlgmr.msra.gmra.mrb[0].mxu1 %v226_v60  ;;  %2777 = vmatmul.mubr.f32.vlgmr.msra.gmra.mrb[0].mxu0 %v430_v61  ;;  %v279_v60 = vcombine.high %v277_v57, %v277_v57  ;;  %v121_v61 = vld [vmem:[#allocation2 + $0x230] sm:$0x3f] }
  0x47   :  { %1103 = vmatpush1.xpose.msra.mxu1 %v63_v9  ;;  %2783 = vmatpush1.xpose.msra.mxu0 %v111_v12  ;;  %v123_v9 = vld [vmem:[#allocation2 + $0x240] sm:$0x3f]  ;;  %v78_v12 = vld [vmem:[#allocation2 + $0xd8] sm:$0x3f] }
  0x48   :  { %1166 = vmatprep.mubr.f32.mxu1 %v244_v10  ;;  %1172 = vmatprep.subr.mxu1 %v66_v15  ;;  %v499_v10 = vcombine.high %v491_v4, %v491_v4  ;;  %v498_v15 = vrot.slane %v484_v11, %v4264_v5 }
  0x49   :  { %2846 = vmatprep.mubr.f32.mxu0 %v448_v13  ;;  %2852 = vmatprep.subr.mxu0 %v114_v16  ;;  %v126_v13 = vld [vmem:[#allocation2 + $0x258] sm:$0x3f]  ;;  %v77_v16 = vld [vmem:[#allocation2 + $0xd0] sm:$0x3f] }
  0x4e   :  { %1167 = vmatmul.mubr.f32.vlgmr.msra.gmra.mrb[0].mxu1 %v236_v7  ;;  %2847 = vmatmul.mubr.f32.vlgmr.msra.gmra.mrb[0].mxu0 %v440_v8  ;;  %v295_v7 = vcombine.high %v287_v3, %v287_v3  ;;  %v280_v8 = vcombine.high %v33_v63, %v33_v63  ;;  %v136_v63 = vld [vmem:[#allocation2 + $0x2a8] sm:$0x3f] }
  0x4f   :  { %1173 = vmatpush1.xpose.msra.mxu1 %v65_v19  ;;  %2853 = vmatpush1.xpose.msra.mxu0 %v113_v21  ;;  %v500_v19 = vcombine.high %v498_v15, %v498_v15  ;;  %v80_v21 = vld [vmem:[#allocation2 + $0xe8] sm:$0x3f] }
  0x50   :  { %1236 = vmatprep.mubr.f32.mxu1 %v245_v20  ;;  %1242 = vmatprep.subr.mxu1 %v68_v24  ;;  %v294_v14 = vrot.slane %v280_v8, %v4264_v5  ;;  %v34_v20 = vld [vmem:[%s4401_s0 + $0x38] sm:$0xff] }
  0x51   :  { %2916 = vmatprep.mubr.f32.mxu0 %v449_v22  ;;  %2922 = vmatprep.subr.mxu0 %v116_v26  ;;  %v46_v22 = vld [vmem:[%s4401_s0 + $0x98] sm:$0xff]  ;;  %v304_v24 = vrot.slane %v34_v20, %v4264_v5  ;;  %v79_v26 = vld [vmem:[#allocation2 + $0xe0] sm:$0x3f] }
  0x52   :  { %v508_v25 = vrot.slane %v46_v22, %v4264_v5  ;;  %v501_v31 = vcombine.high %v46_v22, %v46_v22 }
  0x56   :  { %1237 = vmatmul.mubr.f32.vlgmr.msra.gmra.mrb[0].mxu1 %v243_v17  ;;  %2917 = vmatmul.mubr.f32.vlgmr.msra.gmra.mrb[0].mxu0 %v447_v18  ;;  %v296_v17 = vcombine.high %v294_v14, %v294_v14  ;;  %v125_v18 = vld [vmem:[#allocation2 + $0x250] sm:$0x3f] }
  0x57   :  { %1243 = vmatpush1.xpose.msra.mxu1 %v67_v29  ;;  %2923 = vmatpush1.xpose.msra.mxu0 %v115_v32  ;;  %v127_v29 = vld [vmem:[#allocation2 + $0x260] sm:$0x3f]  ;;  %v82_v32 = vld [vmem:[#allocation2 + $0xf8] sm:$0x3f] }
  0x58   :  { %1306 = vmatprep.mubr.f32.mxu1 %v261_v30  ;;  %1312 = vmatprep.subr.mxu1 %v70_v35  ;;  %v516_v30 = vcombine.high %v508_v25, %v508_v25  ;;  %v515_v35 = vrot.slane %v501_v31, %v4264_v5 }
  0x59   :  { %2986 = vmatprep.mubr.f32.mxu0 %v465_v33  ;;  %2992 = vmatprep.subr.mxu0 %v118_v36  ;;  %v130_v33 = vld [vmem:[#allocation2 + $0x278] sm:$0x3f]  ;;  %v81_v36 = vld [vmem:[#allocation2 + $0xf0] sm:$0x3f] }
  0x5e   :  { %1307 = vmatmul.mubr.f32.vlgmr.msra.gmra.mrb[0].mxu1 %v253_v27  ;;  %2987 = vmatmul.mubr.f32.vlgmr.msra.gmra.mrb[0].mxu0 %v457_v28  ;;  %v312_v27 = vcombine.high %v304_v24, %v304_v24  ;;  %v297_v28 = vcombine.high %v34_v20, %v34_v20  ;;  %v140_v20 = vld [vmem:[#allocation2 + $0x2c8] sm:$0x3f] }
  0x5f   :  { %1313 = vmatpush1.xpose.msra.mxu1 %v69_v39  ;;  %2993 = vmatpush1.xpose.msra.mxu0 %v117_v41  ;;  %v517_v39 = vcombine.high %v515_v35, %v515_v35  ;;  %v84_v41 = vld [vmem:[#allocation2 + $0x108] sm:$0x3f] }
  0x60   :  { %1376 = vmatprep.mubr.f32.mxu1 %v262_v40  ;;  %1382 = vmatprep.subr.mxu1 %v72_v44  ;;  %v311_v34 = vrot.slane %v297_v28, %v4264_v5  ;;  %v35_v40 = vld [vmem:[%s4401_s0 + $0x40] sm:$0xff] }
  0x61   :  { %3056 = vmatprep.mubr.f32.mxu0 %v466_v42  ;;  %3062 = vmatprep.subr.mxu0 %v120_v46  ;;  %v47_v42 = vld [vmem:[%s4401_s0 + $0xa0] sm:$0xff]  ;;  %v321_v44 = vrot.slane %v35_v40, %v4264_v5 }
  0x62   :  { %v525_v45 = vrot.slane %v47_v42, %v4264_v5  ;;  %v83_v46 = vld [vmem:[#allocation2 + $0x100] sm:$0x3f]  ;;  %v518_v51 = vcombine.high %v47_v42, %v47_v42 }
  0x66   :  { %1377 = vmatmul.mubr.f32.vlgmr.msra.gmra.mrb[0].mxu1 %v260_v37  ;;  %3057 = vmatmul.mubr.f32.vlgmr.msra.gmra.mrb[0].mxu0 %v464_v38  ;;  %v313_v37 = vcombine.high %v311_v34, %v311_v34  ;;  %v129_v38 = vld [vmem:[#allocation2 + $0x270] sm:$0x3f] }
  0x67   :  { %1383 = vmatpush1.xpose.msra.mxu1 %v71_v49  ;;  %3063 = vmatpush1.xpose.msra.mxu0 %v119_v52  ;;  %v131_v49 = vld [vmem:[#allocation2 + $0x280] sm:$0x3f]  ;;  %v86_v52 = vld [vmem:[#allocation2 + $0x118] sm:$0x3f] }
  0x68   :  { %1446 = vmatprep.mubr.f32.mxu1 %v278_v50  ;;  %1452 = vmatprep.subr.mxu1 %v74_v55  ;;  %v533_v50 = vcombine.high %v525_v45, %v525_v45  ;;  %v532_v55 = vrot.slane %v518_v51, %v4264_v5 }
  0x69   :  { %3126 = vmatprep.mubr.f32.mxu0 %v482_v53  ;;  %3132 = vmatprep.subr.mxu0 %v122_v56  ;;  %v134_v53 = vld [vmem:[#allocation2 + $0x298] sm:$0x3f]  ;;  %v85_v56 = vld [vmem:[#allocation2 + $0x110] sm:$0x3f] }
  0x6e   :  { %1447 = vmatmul.mubr.f32.vlgmr.msra.gmra.mrb[0].mxu1 %v270_v47  ;;  %3127 = vmatmul.mubr.f32.vlgmr.msra.gmra.mrb[0].mxu0 %v474_v48  ;;  %v329_v47 = vcombine.high %v321_v44, %v321_v44  ;;  %v314_v48 = vcombine.high %v35_v40, %v35_v40  ;;  %v144_v40 = vld [vmem:[#allocation2 + $0x2e8] sm:$0x3f] }
  0x6f   :  { %1453 = vmatpush1.xpose.msra.mxu1 %v73_v59  ;;  %3133 = vmatpush1.xpose.msra.mxu0 %v121_v61  ;;  %v534_v59 = vcombine.high %v532_v55, %v532_v55  ;;  %v88_v61 = vld [vmem:[#allocation2 + $0x128] sm:$0x3f] }
  0x70   :  { %1516 = vmatprep.mubr.f32.mxu1 %v279_v60  ;;  %1522 = vmatprep.subr.mxu1 %v76_v0  ;;  %v328_v54 = vrot.slane %v314_v48, %v4264_v5  ;;  %v36_v60 = vld [vmem:[%s4401_s0 + $0x48] sm:$0xff] }
  0x71   :  { %3196 = vmatprep.mubr.f32.mxu0 %v483_v62  ;;  %3202 = vmatprep.subr.mxu0 %v124_v2  ;;  %v48_v62 = vld [vmem:[%s4401_s0 + $0xa8] sm:$0xff]  ;;  %v338_v0 = vrot.slane %v36_v60, %v4264_v5  ;;  %v87_v2 = vld [vmem:[#allocation2 + $0x120] sm:$0x3f] }
  0x72   :  { %v542_v1 = vrot.slane %v48_v62, %v4264_v5  ;;  %v535_v8 = vcombine.high %v48_v62, %v48_v62 }
  0x76   :  { %1517 = vmatmul.mubr.f32.vlgmr.msra.gmra.mrb[0].mxu1 %v277_v57  ;;  %3197 = vmatmul.mubr.f32.vlgmr.msra.gmra.mrb[0].mxu0 %v481_v58  ;;  %v330_v57 = vcombine.high %v328_v54, %v328_v54  ;;  %v133_v58 = vld [vmem:[#allocation2 + $0x290] sm:$0x3f] }
  0x77   :  { %1523 = vmatpush1.xpose.msra.mxu1 %v75_v6  ;;  %3203 = vmatpush1.xpose.msra.mxu0 %v123_v9  ;;  %v135_v6 = vld [vmem:[#allocation2 + $0x2a0] sm:$0x3f]  ;;  %v90_v9 = vld [vmem:[#allocation2 + $0x138] sm:$0x3f] }
  0x78   :  { %1586 = vmatprep.mubr.f32.mxu1 %v295_v7  ;;  %1592 = vmatprep.subr.mxu1 %v78_v12  ;;  %v550_v7 = vcombine.high %v542_v1, %v542_v1  ;;  %v549_v12 = vrot.slane %v535_v8, %v4264_v5 }
  0x79   :  { %3266 = vmatprep.mubr.f32.mxu0 %v499_v10  ;;  %3272 = vmatprep.subr.mxu0 %v126_v13  ;;  %v138_v10 = vld [vmem:[#allocation2 + $0x2b8] sm:$0x3f]  ;;  %v89_v13 = vld [vmem:[#allocation2 + $0x130] sm:$0x3f] }
  0x7e   :  { %1587 = vmatmul.mubr.f32.vlgmr.msra.gmra.mrb[0].mxu1 %v287_v3  ;;  %3267 = vmatmul.mubr.f32.vlgmr.msra.gmra.mrb[0].mxu0 %v491_v4  ;;  %v346_v3 = vcombine.high %v338_v0, %v338_v0  ;;  %v331_v4 = vcombine.high %v36_v60, %v36_v60 }
  0x7f   :  { %1593 = vmatpush1.xpose.msra.mxu1 %v77_v16  ;;  %3273 = vmatpush1.xpose.msra.mxu0 %v125_v18  ;;  %v551_v16 = vcombine.high %v549_v12, %v549_v12  ;;  %v92_v18 = vld [vmem:[#allocation2 + $0x148] sm:$0x3f] }
  0x80   :  { %1656 = vmatprep.mubr.f32.mxu1 %v296_v17  ;;  %1662 = vmatprep.subr.mxu1 %v80_v21  ;;  %v345_v11 = vrot.slane %v331_v4, %v4264_v5  ;;  %v37_v17 = vld [vmem:[%s4401_s0 + $0x50] sm:$0xff] }
  0x81   :  { %3336 = vmatprep.mubr.f32.mxu0 %v500_v19  ;;  %3342 = vmatprep.subr.mxu0 %v128_v23  ;;  %v49_v19 = vld [vmem:[%s4401_s0 + $0xb0] sm:$0xff]  ;;  %v355_v21 = vrot.slane %v37_v17, %v4264_v5  ;;  %v91_v23 = vld [vmem:[#allocation2 + $0x140] sm:$0x3f] }
  0x82   :  { %v559_v22 = vrot.slane %v49_v19, %v4264_v5  ;;  %v552_v28 = vcombine.high %v49_v19, %v49_v19 }
  0x86   :  { %1657 = vmatmul.mubr.f32.vlgmr.msra.gmra.mrb[0].mxu1 %v294_v14  ;;  %3337 = vmatmul.mubr.f32.vlgmr.msra.gmra.mrb[0].mxu0 %v498_v15  ;;  %v347_v14 = vcombine.high %v345_v11, %v345_v11  ;;  %v137_v15 = vld [vmem:[#allocation2 + $0x2b0] sm:$0x3f] }
  0x87   :  { %1663 = vmatpush1.xpose.msra.mxu1 %v79_v26  ;;  %3343 = vmatpush1.xpose.msra.mxu0 %v127_v29  ;;  %v139_v26 = vld [vmem:[#allocation2 + $0x2c0] sm:$0x3f]  ;;  %v94_v29 = vld [vmem:[#allocation2 + $0x158] sm:$0x3f] }
  0x88   :  { %1726 = vmatprep.mubr.f32.mxu1 %v312_v27  ;;  %1732 = vmatprep.subr.mxu1 %v82_v32  ;;  %v567_v27 = vcombine.high %v559_v22, %v559_v22  ;;  %v566_v32 = vrot.slane %v552_v28, %v4264_v5 }
  0x89   :  { %3406 = vmatprep.mubr.f32.mxu0 %v516_v30  ;;  %3412 = vmatprep.subr.mxu0 %v130_v33  ;;  %v142_v30 = vld [vmem:[#allocation2 + $0x2d8] sm:$0x3f]  ;;  %v93_v33 = vld [vmem:[#allocation2 + $0x150] sm:$0x3f] }
  0x8e   :  { %1727 = vmatmul.mubr.f32.vlgmr.msra.gmra.mrb[0].mxu1 %v304_v24  ;;  %3407 = vmatmul.mubr.f32.vlgmr.msra.gmra.mrb[0].mxu0 %v508_v25  ;;  %v363_v24 = vcombine.high %v355_v21, %v355_v21  ;;  %v348_v25 = vcombine.high %v37_v17, %v37_v17 }
  0x8f   :  { %1733 = vmatpush1.xpose.msra.mxu1 %v81_v36  ;;  %3413 = vmatpush1.xpose.msra.mxu0 %v129_v38  ;;  %v568_v36 = vcombine.high %v566_v32, %v566_v32  ;;  %v96_v38 = vld [vmem:[#allocation2 + $0x168] sm:$0x3f] }
  0x90   :  { %1796 = vmatprep.mubr.f32.mxu1 %v313_v37  ;;  %1802 = vmatprep.subr.mxu1 %v84_v41  ;;  %v362_v31 = vrot.slane %v348_v25, %v4264_v5  ;;  %v38_v37 = vld [vmem:[%s4401_s0 + $0x58] sm:$0xff] }
  0x91   :  { %3476 = vmatprep.mubr.f32.mxu0 %v517_v39  ;;  %3482 = vmatprep.subr.mxu0 %v132_v43  ;;  %v50_v39 = vld [vmem:[%s4401_s0 + $0xb8] sm:$0xff]  ;;  %v372_v41 = vrot.slane %v38_v37, %v4264_v5  ;;  %v95_v43 = vld [vmem:[#allocation2 + $0x160] sm:$0x3f] }
  0x92   :  { %v576_v42 = vrot.slane %v50_v39, %v4264_v5  ;;  %v569_v48 = vcombine.high %v50_v39, %v50_v39 }
  0x96   :  { %1797 = vmatmul.mubr.f32.vlgmr.msra.gmra.mrb[0].mxu1 %v311_v34  ;;  %3477 = vmatmul.mubr.f32.vlgmr.msra.gmra.mrb[0].mxu0 %v515_v35  ;;  %v364_v34 = vcombine.high %v362_v31, %v362_v31  ;;  %v141_v35 = vld [vmem:[#allocation2 + $0x2d0] sm:$0x3f] }
  0x97   :  { %1803 = vmatpush1.xpose.msra.mxu1 %v83_v46  ;;  %3483 = vmatpush1.xpose.msra.mxu0 %v131_v49  ;;  %v143_v46 = vld [vmem:[#allocation2 + $0x2e0] sm:$0x3f]  ;;  %v98_v49 = vld [vmem:[#allocation2 + $0x178] sm:$0x3f] }
  0x98   :  { %1866 = vmatprep.mubr.f32.mxu1 %v329_v47  ;;  %1872 = vmatprep.subr.mxu1 %v86_v52  ;;  %v584_v47 = vcombine.high %v576_v42, %v576_v42  ;;  %v583_v52 = vrot.slane %v569_v48, %v4264_v5 }
  0x99   :  { %3546 = vmatprep.mubr.f32.mxu0 %v533_v50  ;;  %3552 = vmatprep.subr.mxu0 %v134_v53  ;;  %v146_v50 = vld [vmem:[#allocation2 + $0x2f8] sm:$0x3f]  ;;  %v97_v53 = vld [vmem:[#allocation2 + $0x170] sm:$0x3f] }
  0x9e   :  { %1867 = vmatmul.mubr.f32.vlgmr.msra.gmra.mrb[0].mxu1 %v321_v44  ;;  %3547 = vmatmul.mubr.f32.vlgmr.msra.gmra.mrb[0].mxu0 %v525_v45  ;;  %v380_v44 = vcombine.high %v372_v41, %v372_v41  ;;  %v365_v45 = vcombine.high %v38_v37, %v38_v37 }
  0x9f   :  { %1873 = vmatpush1.xpose.msra.mxu1 %v85_v56  ;;  %3553 = vmatpush1.xpose.msra.mxu0 %v133_v58  ;;  %v585_v56 = vcombine.high %v583_v52, %v583_v52 }
  0xa0   :  { %1936 = vmatprep.mubr.f32.mxu1 %v330_v57  ;;  %1942 = vmatprep.subr.mxu1 %v88_v61  ;;  %v379_v51 = vrot.slane %v365_v45, %v4264_v5  ;;  %v4059_v57 = vld [vmem:[%s4403_s2] ss:$0 sm:$0xff] }
  0xa1   :  { %3616 = vmatprep.mubr.f32.mxu0 %v534_v59  ;;  %3622 = vmatprep.subr.mxu0 %v136_v63 }
  0xa6   :  { %1937 = vmatmul.mubr.f32.vlgmr.msra.gmra.mrb[0].mxu1 %v328_v54  ;;  %3617 = vmatmul.mubr.f32.vlgmr.msra.gmra.mrb[0].mxu0 %v532_v55  ;;  %v381_v54 = vcombine.high %v379_v51, %v379_v51  ;;  %v145_v55 = vld [vmem:[#allocation2 + $0x2f0] sm:$0x3f] }
  0xa7   :  { %1943 = vmatpush1.xpose.msra.mxu1 %v87_v2  ;;  %3623 = vmatpush1.xpose.msra.mxu0 %v135_v6 }
  0xa8   :  { %2006 = vmatprep.mubr.f32.mxu1 %v346_v3  ;;  %2012 = vmatprep.subr.mxu1 %v90_v9 }
  0xa9   :  { %3686 = vmatprep.mubr.f32.mxu0 %v550_v7  ;;  %3692 = vmatprep.subr.mxu0 %v138_v10 }
  0xae   :  { %2007 = vmatmul.mubr.f32.vlgmr.msra.gmra.mrb[0].mxu1 %v338_v0  ;;  %3687 = vmatmul.mubr.f32.vlgmr.msra.gmra.mrb[0].mxu0 %v542_v1 }
  0xaf   :  { %2013 = vmatpush1.xpose.msra.mxu1 %v89_v13  ;;  %3693 = vmatpush1.xpose.msra.mxu0 %v137_v15 }
  0xb0   :  { %2076 = vmatprep.mubr.f32.mxu1 %v347_v14  ;;  %2082 = vmatprep.subr.mxu1 %v92_v18 }
  0xb1   :  { %3756 = vmatprep.mubr.f32.mxu0 %v551_v16  ;;  %3762 = vmatprep.subr.mxu0 %v140_v20 }
  0xb6   :  { %2077 = vmatmul.mubr.f32.vlgmr.msra.gmra.mrb[0].mxu1 %v345_v11  ;;  %3757 = vmatmul.mubr.f32.vlgmr.msra.gmra.mrb[0].mxu0 %v549_v12 }
  0xb7   :  { %2083 = vmatpush1.xpose.msra.mxu1 %v91_v23  ;;  %3763 = vmatpush1.xpose.msra.mxu0 %v139_v26 }
  0xb8   :  { %2146 = vmatprep.mubr.f32.mxu1 %v363_v24  ;;  %2152 = vmatprep.subr.mxu1 %v94_v29 }
  0xb9   :  { %3826 = vmatprep.mubr.f32.mxu0 %v567_v27  ;;  %3832 = vmatprep.subr.mxu0 %v142_v30 }
  0xbe   :  { %2147 = vmatmul.mubr.f32.vlgmr.msra.gmra.mrb[0].mxu1 %v355_v21  ;;  %3827 = vmatmul.mubr.f32.vlgmr.msra.gmra.mrb[0].mxu0 %v559_v22 }
  0xbf   :  { %2153 = vmatpush1.xpose.msra.mxu1 %v93_v33  ;;  %3833 = vmatpush1.xpose.msra.mxu0 %v141_v35 }
  0xc0   :  { %2216 = vmatprep.mubr.f32.mxu1 %v364_v34  ;;  %2222 = vmatprep.subr.mxu1 %v96_v38 }
  0xc1   :  { %3896 = vmatprep.mubr.f32.mxu0 %v568_v36  ;;  %3902 = vmatprep.subr.mxu0 %v144_v40 }
  0xc6   :  { %2217 = vmatmul.mubr.f32.vlgmr.msra.gmra.mrb[0].mxu1 %v362_v31  ;;  %3897 = vmatmul.mubr.f32.vlgmr.msra.gmra.mrb[0].mxu0 %v566_v32 }
  0xc7   :  { %2223 = vmatpush1.xpose.msra.mxu1 %v95_v43  ;;  %3903 = vmatpush1.xpose.msra.mxu0 %v143_v46 }
  0xc8   :  { %2286 = vmatprep.mubr.f32.mxu1 %v380_v44  ;;  %2292 = vmatprep.subr.mxu1 %v98_v49 }
  0xc9   :  { %3966 = vmatprep.mubr.f32.mxu0 %v584_v47  ;;  %3972 = vmatprep.subr.mxu0 %v146_v50 }
  0xce   :  { %2287 = vmatmul.mubr.f32.vlgmr.msra.gmra.mrb[0].mxu1 %v372_v41  ;;  %3967 = vmatmul.mubr.f32.vlgmr.msra.gmra.mrb[0].mxu0 %v576_v42 }
  0xcf   :  { %2293 = vmatpush1.xpose.msra.mxu1 %v97_v53  ;;  %3973 = vmatpush1.xpose.msra.mxu0 %v145_v55 }
  0xd0   :  { %2356 = vmatprep.mubr.f32.mxu1 %v381_v54  ;;  %4036 = vmatprep.mubr.f32.mxu0 %v585_v56 }
  0xd6   :  { %2357 = vmatmul.mubr.f32.vlgmr.msra.gmra.mrb[0].mxu1 %v379_v51  ;;  %4037 = vmatmul.mubr.f32.vlgmr.msra.gmra.mrb[0].mxu0 %v583_v52 }
 0x1a9   :  { %v2358_v58 = vpop.f32.mrb[0].mxu1  ;;  %v4038_v59 = vpop.f32.mrb[0].mxu0 }
 0x1aa   :  { %v4060_v5 = vadd.f32 %v4059_v57, %v2358_v58  ;;  %v2360_v60 = vpop.f32.mrb[1].mxu1  ;;  %v4040_v61 = vpop.f32.mrb[1].mxu0 }
 0x1ac   :  { %v4061_v62 = vadd.f32 %v4060_v5, %v4038_v59 }
 0x1ae   :  { %4043 = vst.msk [vmem:[#allocation5] sm:$0x3] %vm4042_vm0, %v4061_v62 }
 0x1af   :  { %4214 = shalt.err (!%p4211_p12)
}
 0x1b0   :  { %s4215_s21 = scalar_lea.hbm %s4404_s3, 32 }
 0x1b1   :  { %p4216_p13 = scmp.ne.s32.totalorder %s4404_s3, %s4215_s21  ;;  %p4219_p0 = scmp.lt.u32.totalorder %s4215_s21, %s4404_s3 }
 0x1b3   :  { %p4221_p1 = pnand %p4219_p0, %p4216_p13 }
 0x1b5   :  { %4224 = shalt.err (!%p4221_p1)
}
 0x1b6   :  { %4053 = dma.vmem_to_hbm [thread:$0]  %s4051_s18, 32, %s4404_s3, [#allocation4]  }
 0x1b7   :  { %4227 = dma.done.wait [#allocation4], 32  }
 0x1b8   :  { %4228 = vsyncadd [#allocation4], 4294967264 }
 0x1b9   :  { %4057 = vsyncpa [#allocation3], 1 }
 0x1ba   :  { %4058 = vsyncpa [#allocation4], 1 }

</bundles_post_ra>
